<compile_context>
chip_gen: v5e
topology: v5e:2x2
jax: 0.10.0
libtpu: 0.0.40
codegen_flags: <defaults>
</compile_context>

<pallas_src>
import functools

import jax
import jax.numpy as jnp
from jax.experimental import pallas as pl
from jax.experimental.pallas import tpu as pltpu


def _round_up(x, m):
    return ((x + m - 1) // m) * m


def _kde_kernel(s_ref, t_ref, out_ref, *, eps):
    # Zero the resident accumulator block on the first grid step.
    @pl.when(pl.program_id(0) == 0)
    def _():
        out_ref[...] = jnp.zeros_like(out_ref)

    xs = s_ref[...].astype(jnp.float32)
    xt = t_ref[...].astype(jnp.float32)

    # Per-row L2 norms over the feature (lane) axis, clamped at eps like
    # F.normalize (denominator = norm.clamp_min(eps)).
    ss = jnp.sum(xs * xs, axis=-1, keepdims=True)            # (TB, 1)
    st = jnp.sum(xt * xt, axis=-1, keepdims=True)            # (TB, 1)
    inv_s = pl.reciprocal(jnp.maximum(jnp.sqrt(ss), eps), approx=False)
    inv_t = pl.reciprocal(jnp.maximum(jnp.sqrt(st), eps), approx=False)

    diff = xs * inv_s - xt * inv_t                            # (TB, D)
    row_sums = jnp.sum(diff * diff, axis=-1, keepdims=True)   # (TB, 1) lane reduce
    partial = jnp.sum(row_sums, axis=0, keepdims=True)        # (1, 1)  sublane reduce

    out_ref[...] += partial


def _choose_block_rows(batch, dim, itemsize):
    # Keep 2 inputs x 2 pipeline buffers under ~20 MiB of VMEM (safe for v7x),
    # cap at 512 rows (near HBM roofline), and never exceed the (padded) batch.
    budget = 20 * 1024 * 1024
    per_row_bytes = 2 * 2 * dim * max(int(itemsize), 4)
    tb = max(8, min(512, budget // max(per_row_bytes, 1)))
    tb = max(8, (tb // 8) * 8)
    tb = min(tb, _round_up(batch, 8))
    return tb


def kde_loss(embedding_s, embedding_t, *, eps=1e-12):
    """Sum-reduced MSE between per-row L2-normalized embeddings ([B, D])."""
    assert embedding_s.ndim == 2 and embedding_s.shape == embedding_t.shape
    batch, dim = embedding_s.shape

    tb = _choose_block_rows(batch, dim, jnp.dtype(embedding_s.dtype).itemsize)
    padded_b = _round_up(batch, tb)
    if padded_b != batch:
        pad = padded_b - batch
        # Zero rows normalize to zero (norm clamped to eps) -> contribute 0.
        embedding_s = jnp.pad(embedding_s, ((0, pad), (0, 0)))
        embedding_t = jnp.pad(embedding_t, ((0, pad), (0, 0)))
    num_tiles = padded_b // tb

    itemsize = jnp.dtype(embedding_s.dtype).itemsize
    cost = pl.CostEstimate(
        flops=8 * padded_b * dim,
        transcendentals=2 * padded_b,
        bytes_accessed=2 * padded_b * dim * itemsize + 4,
    )

    kernel = functools.partial(_kde_kernel, eps=float(eps))

    out = pl.pallas_call(
        kernel,
        out_shape=jax.ShapeDtypeStruct((1, 1), jnp.float32),
        grid=(num_tiles,),
        in_specs=[
            pl.BlockSpec((tb, dim), lambda i: (i, 0)),
            pl.BlockSpec((tb, dim), lambda i: (i, 0)),
        ],
        out_specs=pl.BlockSpec((1, 1), lambda i: (0, 0)),
        compiler_params=pltpu.CompilerParams(
            dimension_semantics=("arbitrary",),
            vmem_limit_bytes=32 * 1024 * 1024,
        ),
        cost_estimate=cost,
    )(embedding_s, embedding_t)
    return out[0, 0]


def kde_loss_ref(embedding_s, embedding_t, eps=1e-12):
    """Pure-JAX reference mirroring the PyTorch module."""
    xs = embedding_s.astype(jnp.float32)
    xt = embedding_t.astype(jnp.float32)
    ns = jnp.maximum(jnp.sqrt(jnp.sum(xs * xs, axis=1, keepdims=True)), eps)
    nt = jnp.maximum(jnp.sqrt(jnp.sum(xt * xt, axis=1, keepdims=True)), eps)
    diff = xs / ns - xt / nt
    return jnp.sum(diff * diff)


if __name__ == "__main__":
    key = jax.random.PRNGKey(0)
    k1, k2 = jax.random.split(key, 2)

    batch, dim = 2, 32
    embedding_s = jax.random.normal(k1, (batch, dim), dtype=jnp.float32)
    embedding_t = jax.random.normal(k2, (batch, dim), dtype=jnp.float32)

    loss = kde_loss(embedding_s, embedding_t)
    jax.block_until_ready(loss)

    ref = kde_loss_ref(embedding_s, embedding_t)
    assert jnp.allclose(loss, ref, rtol=1e-5, atol=1e-5), (loss, ref)

    print("KERNEL_OK")
</pallas_src>

<mosaic_0001>
module attributes {stable_mosaic.version = 11 : i64} {
  func.func @_kde_kernel(%arg0: i32, %arg1: memref<8x32xf32, #tpu.memory_space<vmem>>, %arg2: memref<8x32xf32, #tpu.memory_space<vmem>>, %arg3: memref<1x1xf32, #tpu.memory_space<vmem>>) attributes {dimension_semantics = [#tpu.dimension_semantics<arbitrary>], iteration_bounds = array<i64: 1>, scalar_prefetch = 0 : i64, scratch_operands = 0 : i64, tpu.core_type = #tpu.core_type<tc>, window_params = [{transform_indices = @transform_0, window_bounds = array<i64: 8, 32>}, {transform_indices = @transform_1, window_bounds = array<i64: 8, 32>}, {pipeline_mode = #tpu.pipeline_mode<synchronous>, transform_indices = @transform_2, window_bounds = array<i64: 1, 1>}]} {
    %c0_i32 = arith.constant 0 : i32
    %0 = arith.cmpi eq, %arg0, %c0_i32 : i32
    %1 = arith.extui %0 : i1 to i32
    %c0_i32_0 = arith.constant 0 : i32
    %2 = arith.cmpi ne, %1, %c0_i32_0 : i32
    scf.if %2 {
      %cst_13 = arith.constant 0.000000e+00 : f32
      %32 = vector.broadcast %cst_13 : f32 to vector<1x1xf32>
      %c0_14 = arith.constant 0 : index
      %c0_15 = arith.constant 0 : index
      %33 = vector.load %arg3[%c0_14, %c0_15] : memref<1x1xf32, #tpu.memory_space<vmem>>, vector<1x1xf32>
      tpu.vector_store %arg3[%c0_14, %c0_15], %32 {strides = array<i32>} : memref<1x1xf32, #tpu.memory_space<vmem>>, vector<1x1xf32>,
    } else {
    }
    %c0 = arith.constant 0 : index
    %c0_1 = arith.constant 0 : index
    %3 = vector.load %arg1[%c0, %c0_1] : memref<8x32xf32, #tpu.memory_space<vmem>>, vector<8x32xf32>
    %c0_2 = arith.constant 0 : index
    %c0_3 = arith.constant 0 : index
    %4 = vector.load %arg2[%c0_2, %c0_3] : memref<8x32xf32, #tpu.memory_space<vmem>>, vector<8x32xf32>
    %5 = arith.mulf %3, %3 : vector<8x32xf32>
    %cst = arith.constant dense<0.000000e+00> : vector<8xf32>
    %6 = vector.multi_reduction <add>, %5, %cst [1] : vector<8x32xf32> to vector<8xf32>
    %7 = vector.shape_cast %6 : vector<8xf32> to vector<8x1xf32>
    %8 = arith.mulf %4, %4 : vector<8x32xf32>
    %cst_4 = arith.constant dense<0.000000e+00> : vector<8xf32>
    %9 = vector.multi_reduction <add>, %8, %cst_4 [1] : vector<8x32xf32> to vector<8xf32>
    %10 = vector.shape_cast %9 : vector<8xf32> to vector<8x1xf32>
    %11 = math.sqrt %7 : vector<8x1xf32>
    %cst_5 = arith.constant 9.99999996E-13 : f32
    %12 = vector.broadcast %cst_5 : f32 to vector<8x1xf32>
    %13 = arith.maximumf %11, %12 : vector<8x1xf32>
    %14 = tpu.reciprocal %13 : vector<8x1xf32> -> vector<8x1xf32>
    %15 = math.sqrt %10 : vector<8x1xf32>
    %cst_6 = arith.constant 9.99999996E-13 : f32
    %16 = vector.broadcast %cst_6 : f32 to vector<8x1xf32>
    %17 = arith.maximumf %15, %16 : vector<8x1xf32>
    %18 = tpu.reciprocal %17 : vector<8x1xf32> -> vector<8x1xf32>
    %19 = vector.broadcast %14 : vector<8x1xf32> to vector<8x32xf32>
    %20 = arith.mulf %3, %19 : vector<8x32xf32>
    %21 = vector.broadcast %18 : vector<8x1xf32> to vector<8x32xf32>
    %22 = arith.mulf %4, %21 : vector<8x32xf32>
    %23 = arith.subf %20, %22 : vector<8x32xf32>
    %24 = arith.mulf %23, %23 : vector<8x32xf32>
    %cst_7 = arith.constant dense<0.000000e+00> : vector<8xf32>
    %25 = vector.multi_reduction <add>, %24, %cst_7 [1] : vector<8x32xf32> to vector<8xf32>
    %26 = vector.shape_cast %25 : vector<8xf32> to vector<8x1xf32>
    %cst_8 = arith.constant dense<0.000000e+00> : vector<1xf32>
    %27 = vector.multi_reduction <add>, %26, %cst_8 [0] : vector<8x1xf32> to vector<1xf32>
    %28 = vector.shape_cast %27 : vector<1xf32> to vector<1x1xf32>
    %c0_9 = arith.constant 0 : index
    %c0_10 = arith.constant 0 : index
    %29 = vector.load %arg3[%c0_9, %c0_10] : memref<1x1xf32, #tpu.memory_space<vmem>>, vector<1x1xf32>
    %30 = arith.addf %29, %28 : vector<1x1xf32>
    %c0_11 = arith.constant 0 : index
    %c0_12 = arith.constant 0 : index
    %31 = vector.load %arg3[%c0_11, %c0_12] : memref<1x1xf32, #tpu.memory_space<vmem>>, vector<1x1xf32>
    tpu.vector_store %arg3[%c0_11, %c0_12], %30 {strides = array<i32>} : memref<1x1xf32, #tpu.memory_space<vmem>>, vector<1x1xf32>,
    return
  }
  func.func @transform_0(%arg0: i32) -> (i32, i32) {
    %c0_i32 = arith.constant 0 : i32
    %c0_i32_0 = arith.constant 0 : i32
    return %arg0, %c0_i32 : i32, i32
  }
  func.func @transform_1(%arg0: i32) -> (i32, i32) {
    %c0_i32 = arith.constant 0 : i32
    %c0_i32_0 = arith.constant 0 : i32
    return %arg0, %c0_i32 : i32, i32
  }
  func.func @transform_2(%arg0: i32) -> (i32, i32) {
    %c0_i32 = arith.constant 0 : i32
    %c0_i32_0 = arith.constant 0 : i32
    %c0_i32_1 = arith.constant 0 : i32
    return %c0_i32, %c0_i32_0 : i32, i32
  }
}

</mosaic_0001>

<bundles_post_ra>
// kernel: tpu_custom_call.1
= control target key start
LH: loop header
LB: loop body
LE: loop exit
PB: predicated region body
PF: predicated region fallthrough
CT: control target
= control target key end

     0   :  { %7 = vsyncpa [#allocation3], 0  ;;  %s279_s0 = inlined_call_operand.hbm [shape: f32[8,32], index: 0, kind: input, shape index: {}]   ;;  %s280_s1 = inlined_call_operand.hbm [shape: f32[8,32], index: 1, kind: input, shape index: {}]   ;;  %s281_s2 = inlined_call_operand.hbm [shape: f32[1,1], index: 2, kind: output, shape index: {}]  }
   0x1   :  { %8 = vsyncpa [#allocation6], 0 }
   0x2   :  { %9 = vsyncpa [#allocation4], 0  ;;  %s15_s11 = sshll.u32 %s279_s0, 4  ;;  %s236_s12 = smov [#allocation2]   ;;  %s16_s11 = int_to_ptr.hbm [resolvable:$true] %s15_s11 }
   0x3   :  { %s17_s13 = sshll.u32 %s236_s12, 4  ;;  %s26_s16 = sshll.u32 %s280_s1, 4  ;;  %s18_s13 = int_to_ptr.vmem [resolvable:$true] %s17_s13  ;;  %s27_s16 = int_to_ptr.hbm [resolvable:$true] %s26_s16 }
   0x4   :  { %20 = dma.hbm_to_vmem [thread:$0]  %s16_s11, 128, %s18_s13, [#allocation3]  }
   0x5   :  { %s237_s17 = smov [#allocation5]  }
   0x6   :  { %s28_s18 = sshll.u32 %s237_s17, 4  ;;  %s29_s18 = int_to_ptr.vmem [resolvable:$true] %s28_s18 }
   0x7   :  { %31 = dma.hbm_to_vmem [thread:$0]  %s27_s16, 128, %s29_s18, [#allocation6]  }
   0x8   :  { %230 = dma.done.wait [#allocation3], 128  }
   0x9   :  { %231 = vsyncadd [#allocation3], 4294967168 }
   0xa   :  { %232 = dma.done.wait [#allocation6], 128  }
   0xb   :  { %233 = vsyncadd [#allocation6], 4294967168  ;;  %vm44_vm0 = vcmask 0   ;;  %v238_v0 = vmov 0.0   ;;  %v262_v1 = vld [vmem:[#allocation2] sm:$0xff]  ;;  %vm49_vm1 = vcmask 261120  }
   0xc   :  { %45 = vst.msk [vmem:[#allocation7] sm:$0x1] %vm44_vm0, %v238_v0  ;;  %v48_v2 = vmul.f32 %v262_v1, %v262_v1  ;;  %v266_v3 = vld [vmem:[#allocation5] sm:$0xff]  ;;  %s239_s0 = smov [#allocation7]   ;;  %s135_s21 = sshll.u32 %s281_s2, 4  ;;  %s136_s21 = int_to_ptr.hbm [resolvable:$true] %s135_s21 }
   0xd   :  { %v53_v5 = vmul.f32 %v266_v3, %v266_v3  ;;  %s133_s1 = sshll.u32 %s239_s0, 4  ;;  %s134_s1 = int_to_ptr.vmem [resolvable:$true] %s133_s1 }
   0xe   :  { %v50_v4 = vsel %vm49_vm1, %v48_v2, 0.0 }
   0xf   :  { %51 = vadd.xlane.f32.xlu0 %v50_v4  ;;  %v54_v6 = vsel %vm49_vm1, %v53_v5, 0.0 }
  0x13   :  { %v124_v62 = vld [vmem:[#allocation7] sm:$0x1] }
  0x17   :  { %55 = vadd.xlane.f32.xlu0 %v54_v6 }
  0x82   :  { %v52_v7 = vpop.xlane.xlu0 %51 }
  0x83   :  { %150 = vrsqrt.f32 %v52_v7  ;;  %vm64_vm2 = vcmp.eq.f32.partialorder %v52_v7, inf  ;;  %v67_v19 = vand.u32 2147483648, %v52_v7  ;;  %vm66_vm3 = vcmp.eq.f32.partialorder %v52_v7, 0.0 }
  0x89   :  { %v151_v8 = vpop.eup %150 }
  0x8a   :  { %v58_v9 = vmul.f32 %v151_v8, %v52_v7  ;;  %v56_v10 = vpop.xlane.xlu0 %55 }
  0x8b   :  { %152 = vrsqrt.f32 %v56_v10  ;;  %vm91_vm4 = vcmp.eq.f32.partialorder %v56_v10, inf  ;;  %v94_v27 = vand.u32 2147483648, %v56_v10  ;;  %vm93_vm5 = vcmp.eq.f32.partialorder %v56_v10, 0.0 }
  0x8c   :  { %v59_v11 = vmul.f32 %v151_v8, %v58_v9 }
  0x8e   :  { %v60_v12 = vmul.f32 0.5, %v59_v11 }
  0x90   :  { %v61_v13 = vsub.f32 1.5, %v60_v12 }
  0x91   :  { %v153_v14 = vpop.eup %152 }
  0x92   :  { %v62_v15 = vmul.f32 %v151_v8, %v61_v13  ;;  %v85_v16 = vmul.f32 %v153_v14, %v56_v10 }
  0x94   :  { %v63_v17 = vmul.f32 %v62_v15, %v52_v7  ;;  %v86_v18 = vmul.f32 %v153_v14, %v85_v16 }
  0x96   :  { %v65_v20 = vsel %vm64_vm2, %v52_v7, %v63_v17  ;;  %v87_v21 = vmul.f32 0.5, %v86_v18 }
  0x97   :  { %v68_v22 = vsel %vm66_vm3, %v67_v19, %v65_v20 }
  0x98   :  { %v69_v23 = vmax.f32 %v68_v22, 1e-12  ;;  %v88_v24 = vsub.f32 1.5, %v87_v21 }
  0x9a   :  { %154 = vrcp.f32 %v69_v23  ;;  %v89_v25 = vmul.f32 %v153_v14, %v88_v24  ;;  %v81_v38 = vand.u32 2147483648, %v69_v23  ;;  %vm75_vm7 = vweird.f32 %v69_v23 }
  0x9b   :  { %v79_v39 = vand.u32 2147483647, %v69_v23 }
  0x9c   :  { %v90_v26 = vmul.f32 %v89_v25, %v56_v10  ;;  %v82_v45 = vor.u32 1.1754944e-38, %v81_v38 }
  0x9d   :  { %vm80_vm10 = vcmp.eq.f32.partialorder %v79_v39, 8.507059e+37 }
  0x9e   :  { %v92_v28 = vsel %vm91_vm4, %v56_v10, %v90_v26 }
  0x9f   :  { %v95_v29 = vsel %vm93_vm5, %v94_v27, %v92_v28 }
  0xa0   :  { %v155_v30 = vpop.eup %154  ;;  %v96_v31 = vmax.f32 %v95_v29, 1e-12 }
  0xa1   :  { %v71_v32 = vmul.f32 %v155_v30, %v69_v23  ;;  %vm76_vm6 = vweird.f32 %v155_v30 }
  0xa2   :  { %156 = vrcp.f32 %v96_v31  ;;  %vm77_vm8 = vmor %vm75_vm7, %vm76_vm6  ;;  %v108_v41 = vand.u32 2147483648, %v96_v31  ;;  %v106_v44 = vand.u32 2147483647, %v96_v31  ;;  %vm102_vm11 = vweird.f32 %v96_v31 }
  0xa3   :  { %v72_v33 = vsub.f32 1.0, %v71_v32 }
  0xa4   :  { %v109_v48 = vor.u32 1.1754944e-38, %v108_v41  ;;  %vm107_vm13 = vcmp.eq.f32.partialorder %v106_v44, 8.507059e+37 }
  0xa5   :  { %v73_v34 = vmul.f32 %v155_v30, %v72_v33 }
  0xa7   :  { %v74_v36 = vadd.f32 %v155_v30, %v73_v34 }
  0xa8   :  { %v157_v35 = vpop.eup %156 }
  0xa9   :  { %v98_v37 = vmul.f32 %v157_v35, %v96_v31  ;;  %v78_v42 = vsel %vm77_vm8, %v155_v30, %v74_v36  ;;  %vm103_vm9 = vweird.f32 %v157_v35 }
  0xaa   :  { %v83_v47 = vsel %vm80_vm10, %v82_v45, %v78_v42  ;;  %vm104_vm12 = vmor %vm102_vm11, %vm103_vm9 }
  0xab   :  { %v99_v40 = vsub.f32 1.0, %v98_v37  ;;  %v111_v51 = vmul.f32 %v83_v47, %v262_v1 }
  0xad   :  { %v100_v43 = vmul.f32 %v157_v35, %v99_v40 }
  0xaf   :  { %v101_v46 = vadd.f32 %v157_v35, %v100_v43 }
  0xb1   :  { %v105_v49 = vsel %vm104_vm12, %v157_v35, %v101_v46 }
  0xb2   :  { %v110_v50 = vsel %vm107_vm13, %v109_v48, %v105_v49 }
  0xb3   :  { %v112_v52 = vmul.f32 %v110_v50, %v266_v3 }
  0xb5   :  { %v113_v53 = vsub.f32 %v111_v51, %v112_v52 }
  0xb7   :  { %v114_v54 = vmul.f32 %v113_v53, %v113_v53 }
  0xb9   :  { %v115_v55 = vsel %vm49_vm1, %v114_v54, 0.0 }
  0xba   :  { %116 = vadd.xlane.f32.xlu1 %v115_v55 }
 0x12d   :  { %v117_v56 = vpop.xlane.xlu1 %116 }
 0x12e   :  { %v118_v57 = vrot.slane %v117_v56, 4 }
 0x130   :  { %v119_v58 = vadd.f32 %v118_v57, %v117_v56 }
 0x132   :  { %v120_v59 = vrot.slane %v119_v58, 2 }
 0x134   :  { %v121_v60 = vadd.f32 %v120_v59, %v119_v58 }
 0x136   :  { %v122_v61 = vrot.slane %v121_v60, 1 }
 0x138   :  { %v123_v63 = vadd.f32 %v122_v61, %v121_v60 }
 0x13a   :  { %v125_v0 = vadd.f32 %v124_v62, %v123_v63 }
 0x13c   :  { %127 = vst.msk [vmem:[#allocation7] sm:$0x1] %vm44_vm0, %v125_v0 }
 0x13d   :  { %138 = dma.vmem_to_hbm [thread:$0]  %s134_s1, 16, %s136_s21, [#allocation4]  }
 0x13e   :  { %234 = dma.done.wait [#allocation4], 16  }
 0x13f   :  { %235 = vsyncadd [#allocation4], 4294967280 }
 0x140   :  { %143 = vsyncpa [#allocation3], 1 }
 0x141   :  { %144 = vsyncpa [#allocation6], 1 }
 0x142   :  { %145 = vsyncpa [#allocation4], 1 }

</bundles_post_ra>
